<compile_context>
chip_gen: v7x
topology: tpu7x:2x2x1
jax: 0.10.0
libtpu: 0.0.40
codegen_flags: <defaults>
</compile_context>

<pallas_src>
import math
import functools

import jax
import jax.numpy as jnp
from jax.experimental import pallas as pl
from jax.experimental.pallas import tpu as pltpu


def _round_up(a: int, b: int) -> int:
    return (a + b - 1) // b * b


def _hadamard_matrix(n: int) -> jnp.ndarray:
    """Sylvester construction of the n x n (+1/-1) Hadamard matrix, n = 2^k."""
    H = jnp.array([[1.0]], dtype=jnp.float32)
    while H.shape[0] < n:
        H = jnp.concatenate(
            [jnp.concatenate([H, H], axis=1),
             jnp.concatenate([H, -H], axis=1)],
            axis=0,
        )
    return H


def _hbitlinear_kernel(c_ref, x_ref, g_ref, b_ref, h_ref, w_ref, o_ref,
                       xq_ref, amax_ref, *, in_features, eps, needs_mask):
    """Grid = (row tiles i, output tiles j); j is the inner ('arbitrary') axis.

    At j==0 the row tile is LayerNorm'ed, Hadamard-transformed and int8
    quantized once; the integer codes (bf16) + per-row amax are cached in VMEM
    scratch and reused for every output tile j.
    """
    j = pl.program_id(1)

    @pl.when(j == 0)
    def _prepare_activations():
        x = x_ref[...]                                   # (tm, P) f32, zero-padded cols
        # ---- LayerNorm over the first `in_features` columns (pad cols are 0) ----
        mean = jnp.sum(x, axis=-1, keepdims=True) / in_features
        diff = x - mean
        if needs_mask:
            mask = jax.lax.broadcasted_iota(jnp.int32, x.shape, 1) < in_features
            diff = jnp.where(mask, diff, 0.0)
        var = jnp.sum(diff * diff, axis=-1, keepdims=True) / in_features
        # gamma/beta are zero in the padded columns, so padded cols stay 0.
        x_norm = diff * jax.lax.rsqrt(var + eps) * g_ref[...] + b_ref[...]

        # ---- Hadamard transform (orthonormal, H/sqrt(P)) on the MXU ----
        x_had = jnp.dot(x_norm, h_ref[...], preferred_element_type=jnp.float32)

        # ---- Activation quant: per-token absmax int8; keep the *integer*
        #      codes, rescale after the quantized matmul. ----
        amax = jnp.maximum(jnp.max(jnp.abs(x_had), axis=-1, keepdims=True), 1e-5)
        a_scale = 127.0 / amax
        xq = jnp.clip(jnp.round(x_had * a_scale), -128.0, 127.0)
        xq_ref[...] = xq.astype(jnp.bfloat16)            # integers: exact in bf16
        amax_ref[...] = amax

    # ---- Quantized matmul on the MXU (bf16 in, f32 accumulate) ----
    acc = jnp.dot(xq_ref[...], w_ref[...], preferred_element_type=jnp.float32)
    # Dequant: per-row amax/127 and per-tensor weight scale (SMEM scalar).
    o_ref[...] = acc * (amax_ref[...] * c_ref[0])


def hbitlinear_forward(x, weight, gamma, beta, *, in_features, padded_in,
                       tm=256, tn=512):
    """x: (batch, seq, in_features) f32; weight: (out_features, padded_in) f32."""
    batch, seq, _ = x.shape
    M = batch * seq
    out_features = weight.shape[0]

    # ---- row tiling (multiple of 8, amortizes per-step overhead / fills MXU) ----
    m8 = _round_up(M, 8)
    tm = min(tm, m8)
    m_pad = _round_up(m8, tm)

    # ---- output tiling: lane-dense (multiple of 128) ----
    out_pad = _round_up(out_features, 128)
    tn = math.gcd(out_pad, min(tn, out_pad))             # multiple of 128, divides out_pad

    needs_mask = padded_in != in_features
    pad_cols = padded_in - in_features

    x2d = x.reshape(M, in_features).astype(jnp.float32)
    x2d = jnp.pad(x2d, ((0, m_pad - M), (0, pad_cols)))  # zero-pad rows + cols
    g = jnp.pad(gamma.astype(jnp.float32), (0, pad_cols)).reshape(1, padded_in)
    b = jnp.pad(beta.astype(jnp.float32), (0, pad_cols)).reshape(1, padded_in)

    # Orthonormal Hadamard kept in f32 so x_had matches the f32 reference path
    # (int8 rounding-boundary parity).
    # TODO(synk): for very large padded_in, replace with a butterfly FWHT
    # (log2(P) roll+add stages) so no P x P matrix must be VMEM-resident.
    H = _hadamard_matrix(padded_in) / jnp.sqrt(jnp.float32(padded_in))

    # ---- Weight quant hoisted out of the kernel (per-tensor absmean ternary) ----
    w = weight.astype(jnp.float32)
    w_dq = jnp.maximum(jnp.mean(jnp.abs(w)), 1e-5)       # per-TENSOR absmean (padded)
    w_scale = 1.0 / w_dq
    w_int = jnp.clip(jnp.round(w * w_scale), -1.0, 1.0)  # ternary {-1,0,1}
    # pre-transpose + pad output dim; {-1,0,1} is exact in bf16
    w_t = jnp.pad(w_int, ((0, out_pad - out_features), (0, 0))).T.astype(jnp.bfloat16)

    # combined per-tensor output scale (weight dequant / 127), SMEM scalar
    c = ((1.0 / w_scale) / 127.0).reshape(1).astype(jnp.float32)

    kernel = functools.partial(
        _hbitlinear_kernel, in_features=in_features, eps=1e-6,
        needs_mask=needs_mask)

    grid = (m_pad // tm, out_pad // tn)

    # rough VMEM budget (double-buffered inputs/outputs + scratch), clamped
    est = (
        2 * 4 * tm * padded_in                 # x tile (f32)
        + 2 * 4 * 2 * padded_in                # gamma + beta
        + 2 * 4 * padded_in * padded_in        # Hadamard matrix
        + 2 * 2 * padded_in * tn               # bf16 weight tile
        + 2 * 4 * tm * tn                      # output tile
        + 2 * tm * padded_in + 4 * tm          # scratch (bf16 codes + amax)
    )
    vmem_limit = int(min(max(2 * est, 32 * 1024 * 1024), 64 * 1024 * 1024))

    out = pl.pallas_call(
        kernel,
        out_shape=jax.ShapeDtypeStruct((m_pad, out_pad), jnp.float32),
        grid_spec=pltpu.PrefetchScalarGridSpec(
            num_scalar_prefetch=1,
            grid=grid,
            in_specs=[
                pl.BlockSpec((tm, padded_in), lambda i, j, c: (i, 0)),          # x rows
                pl.BlockSpec((1, padded_in), lambda i, j, c: (0, 0)),           # gamma
                pl.BlockSpec((1, padded_in), lambda i, j, c: (0, 0)),           # beta
                pl.BlockSpec((padded_in, padded_in), lambda i, j, c: (0, 0)),   # Hadamard
                pl.BlockSpec((padded_in, tn), lambda i, j, c: (0, j)),          # W^T tile (bf16)
            ],
            out_specs=pl.BlockSpec((tm, tn), lambda i, j, c: (i, j)),
            scratch_shapes=[
                pltpu.VMEM((tm, padded_in), jnp.bfloat16),   # cached int8 codes
                pltpu.VMEM((tm, 1), jnp.float32),            # cached per-row amax
            ],
        ),
        compiler_params=pltpu.CompilerParams(
            dimension_semantics=("parallel", "arbitrary"),
            vmem_limit_bytes=vmem_limit,
        ),
    )(c, x2d, g, b, H, w_t)

    return out[:M, :out_features].reshape(batch, seq, out_features)


def _reference(x, weight, gamma, beta, in_features, padded_in):
    """Pure-JAX reference of the same forward semantics."""
    mean = jnp.mean(x, axis=-1, keepdims=True)
    var = jnp.mean((x - mean) ** 2, axis=-1, keepdims=True)
    xn = (x - mean) / jnp.sqrt(var + 1e-6) * gamma + beta
    pad = padded_in - in_features
    if pad:
        xn = jnp.pad(xn, ((0, 0), (0, 0), (0, pad)))
    H = _hadamard_matrix(padded_in) / jnp.sqrt(jnp.float32(padded_in))
    xh = xn @ H
    amax = jnp.max(jnp.abs(xh), axis=-1, keepdims=True)
    a_scale = 127.0 / jnp.maximum(amax, 1e-5)
    xq = jnp.clip(jnp.round(xh * a_scale), -128.0, 127.0) / a_scale
    w_scale = 1.0 / jnp.maximum(jnp.mean(jnp.abs(weight)), 1e-5)
    wq = jnp.clip(jnp.round(weight * w_scale), -1.0, 1.0) / w_scale
    return xq @ wq.T


if __name__ == "__main__":
    batch, seq = 2, 8
    in_features, out_features = 32, 64

    # Intended padding rule: pad in_features up to the next power of two.
    # TODO(synk): the reference `in_features & in_features - 1 != 0` has an
    # operator-precedence quirk (only triggers for odd in_features); we use a
    # power-of-2 in_features here so both interpretations agree (no padding).
    if in_features & (in_features - 1) != 0:
        padded_in = 2 ** math.ceil(math.log2(in_features))
    else:
        padded_in = in_features

    key = jax.random.PRNGKey(0)
    kx, kw = jax.random.split(key)
    x = jax.random.normal(kx, (batch, seq, in_features), dtype=jnp.float32)
    weight = jax.random.normal(kw, (out_features, padded_in),
                               dtype=jnp.float32) * 0.02
    gamma = jnp.ones((in_features,), jnp.float32)   # nn.LayerNorm init
    beta = jnp.zeros((in_features,), jnp.float32)

    out = hbitlinear_forward(x, weight, gamma, beta,
                             in_features=in_features, padded_in=padded_in)
    out = jax.block_until_ready(out)

    ref = _reference(x, weight, gamma, beta, in_features, padded_in)
    assert out.shape == (batch, seq, out_features)
    assert jnp.allclose(out, ref, atol=1e-4, rtol=1e-4), "mismatch vs reference"

    print("KERNEL_OK")
</pallas_src>

<mosaic_0001>
module attributes {stable_mosaic.version = 11 : i64} {
  func.func @_hbitlinear_kernel(%arg0: i32, %arg1: i32, %arg2: memref<1xf32, #tpu.memory_space<smem>>, %arg3: memref<16x32xf32, #tpu.memory_space<vmem>>, %arg4: memref<1x32xf32, #tpu.memory_space<vmem>>, %arg5: memref<1x32xf32, #tpu.memory_space<vmem>>, %arg6: memref<32x32xf32, #tpu.memory_space<vmem>>, %arg7: memref<32x128xbf16, #tpu.memory_space<vmem>>, %arg8: memref<16x128xf32, #tpu.memory_space<vmem>>, %arg9: memref<16x32xbf16, #tpu.memory_space<vmem>>, %arg10: memref<16x1xf32, #tpu.memory_space<vmem>>) attributes {dimension_semantics = [#tpu.dimension_semantics<parallel>, #tpu.dimension_semantics<arbitrary>], iteration_bounds = array<i64: 1, 1>, scalar_prefetch = 1 : i64, scratch_operands = 2 : i64, tpu.core_type = #tpu.core_type<tc>, window_params = [{transform_indices = @transform_0, window_bounds = array<i64: 16, 32>}, {pipeline_mode = #tpu.pipeline_mode<synchronous>, transform_indices = @transform_1, window_bounds = array<i64: 1, 32>}, {pipeline_mode = #tpu.pipeline_mode<synchronous>, transform_indices = @transform_2, window_bounds = array<i64: 1, 32>}, {pipeline_mode = #tpu.pipeline_mode<synchronous>, transform_indices = @transform_3, window_bounds = array<i64: 32, 32>}, {transform_indices = @transform_4, window_bounds = array<i64: 32, 128>}, {transform_indices = @transform_5, window_bounds = array<i64: 16, 128>}]} {
    %c0_i32 = arith.constant 0 : i32
    %0 = arith.cmpi eq, %arg1, %c0_i32 : i32
    %1 = arith.extui %0 : i1 to i32
    %c0_i32_0 = arith.constant 0 : i32
    %2 = arith.cmpi ne, %1, %c0_i32_0 : i32
    scf.if %2 {
      %c0_9 = arith.constant 0 : index
      %c0_10 = arith.constant 0 : index
      %13 = vector.load %arg3[%c0_9, %c0_10] : memref<16x32xf32, #tpu.memory_space<vmem>>, vector<16x32xf32>
      %cst_11 = arith.constant dense<0.000000e+00> : vector<16xf32>
      %14 = vector.multi_reduction <add>, %13, %cst_11 [1] : vector<16x32xf32> to vector<16xf32>
      %15 = vector.shape_cast %14 : vector<16xf32> to vector<16x1xf32>
      %cst_12 = arith.constant 3.200000e+01 : f32
      %16 = vector.broadcast %cst_12 : f32 to vector<16x1xf32>
      %17 = arith.divf %15, %16 : vector<16x1xf32>
      %18 = vector.broadcast %17 : vector<16x1xf32> to vector<16x32xf32>
      %19 = arith.subf %13, %18 : vector<16x32xf32>
      %20 = arith.mulf %19, %19 : vector<16x32xf32>
      %cst_13 = arith.constant dense<0.000000e+00> : vector<16xf32>
      %21 = vector.multi_reduction <add>, %20, %cst_13 [1] : vector<16x32xf32> to vector<16xf32>
      %22 = vector.shape_cast %21 : vector<16xf32> to vector<16x1xf32>
      %cst_14 = arith.constant 3.200000e+01 : f32
      %23 = vector.broadcast %cst_14 : f32 to vector<16x1xf32>
      %24 = arith.divf %22, %23 : vector<16x1xf32>
      %cst_15 = arith.constant 9.99999997E-7 : f32
      %25 = vector.broadcast %cst_15 : f32 to vector<16x1xf32>
      %26 = arith.addf %24, %25 : vector<16x1xf32>
      %27 = math.rsqrt %26 : vector<16x1xf32>
      %28 = vector.broadcast %27 : vector<16x1xf32> to vector<16x32xf32>
      %29 = arith.mulf %19, %28 : vector<16x32xf32>
      %c0_16 = arith.constant 0 : index
      %c0_17 = arith.constant 0 : index
      %30 = vector.load %arg4[%c0_16, %c0_17] : memref<1x32xf32, #tpu.memory_space<vmem>>, vector<1x32xf32>
      %31 = vector.broadcast %30 : vector<1x32xf32> to vector<16x32xf32>
      %32 = arith.mulf %29, %31 : vector<16x32xf32>
      %c0_18 = arith.constant 0 : index
      %c0_19 = arith.constant 0 : index
      %33 = vector.load %arg5[%c0_18, %c0_19] : memref<1x32xf32, #tpu.memory_space<vmem>>, vector<1x32xf32>
      %34 = vector.broadcast %33 : vector<1x32xf32> to vector<16x32xf32>
      %35 = arith.addf %32, %34 : vector<16x32xf32>
      %c0_20 = arith.constant 0 : index
      %c0_21 = arith.constant 0 : index
      %36 = vector.load %arg6[%c0_20, %c0_21] : memref<32x32xf32, #tpu.memory_space<vmem>>, vector<32x32xf32>
      %cst_22 = arith.constant dense<0.000000e+00> : vector<16x32xf32>
      %37 = tpu.matmul %35, %36, %cst_22 {dimension_numbers = #tpu.dot_dimension_numbers<[1], [0], [0], [1], [0, 0, 1, 1], [], []>} : vector<16x32xf32>, vector<32x32xf32>, vector<16x32xf32> -> vector<16x32xf32>
      %38 = math.absf %37 : vector<16x32xf32>
      %cst_23 = arith.constant dense<0xFF800000> : vector<16xf32>
      %39 = vector.multi_reduction <maximumf>, %38, %cst_23 [1] : vector<16x32xf32> to vector<16xf32>
      %40 = vector.shape_cast %39 : vector<16xf32> to vector<16x1xf32>
      %cst_24 = arith.constant 9.99999974E-6 : f32
      %41 = vector.broadcast %cst_24 : f32 to vector<16x1xf32>
      %42 = arith.maximumf %40, %41 : vector<16x1xf32>
      %cst_25 = arith.constant 1.270000e+02 : f32
      %43 = vector.broadcast %cst_25 : f32 to vector<16x1xf32>
      %44 = arith.divf %43, %42 : vector<16x1xf32>
      %45 = vector.broadcast %44 : vector<16x1xf32> to vector<16x32xf32>
      %46 = arith.mulf %37, %45 : vector<16x32xf32>
      %47 = math.roundeven %46 : vector<16x32xf32>
      %cst_26 = arith.constant -1.280000e+02 : f32
      %cst_27 = arith.constant 1.270000e+02 : f32
      %48 = vector.broadcast %cst_26 : f32 to vector<16x32xf32>
      %49 = arith.maximumf %48, %47 : vector<16x32xf32>
      %50 = vector.broadcast %cst_27 : f32 to vector<16x32xf32>
      %51 = arith.minimumf %50, %49 : vector<16x32xf32>
      %52 = arith.truncf %51 : vector<16x32xf32> to vector<16x32xbf16>
      %c0_28 = arith.constant 0 : index
      %c0_29 = arith.constant 0 : index
      %53 = vector.load %arg9[%c0_28, %c0_29] : memref<16x32xbf16, #tpu.memory_space<vmem>>, vector<16x32xbf16>
      tpu.vector_store %arg9[%c0_28, %c0_29], %52 {strides = array<i32>} : memref<16x32xbf16, #tpu.memory_space<vmem>>, vector<16x32xbf16>,
      %c0_30 = arith.constant 0 : index
      %c0_31 = arith.constant 0 : index
      %54 = vector.load %arg10[%c0_30, %c0_31] : memref<16x1xf32, #tpu.memory_space<vmem>>, vector<16x1xf32>
      tpu.vector_store %arg10[%c0_30, %c0_31], %42 {strides = array<i32>} : memref<16x1xf32, #tpu.memory_space<vmem>>, vector<16x1xf32>,
    } else {
    }
    %c0 = arith.constant 0 : index
    %c0_1 = arith.constant 0 : index
    %3 = vector.load %arg9[%c0, %c0_1] : memref<16x32xbf16, #tpu.memory_space<vmem>>, vector<16x32xbf16>
    %c0_2 = arith.constant 0 : index
    %c0_3 = arith.constant 0 : index
    %4 = vector.load %arg7[%c0_2, %c0_3] : memref<32x128xbf16, #tpu.memory_space<vmem>>, vector<32x128xbf16>
    %cst = arith.constant dense<0.000000e+00> : vector<16x128xf32>
    %5 = tpu.matmul %3, %4, %cst {dimension_numbers = #tpu.dot_dimension_numbers<[1], [0], [0], [1], [0, 0, 1, 1], [], []>} : vector<16x32xbf16>, vector<32x128xbf16>, vector<16x128xf32> -> vector<16x128xf32>
    %c0_4 = arith.constant 0 : index
    %c0_5 = arith.constant 0 : index
    %6 = vector.load %arg10[%c0_4, %c0_5] : memref<16x1xf32, #tpu.memory_space<vmem>>, vector<16x1xf32>
    %c0_6 = arith.constant 0 : index
    %7 = memref.load %arg2[%c0_6] : memref<1xf32, #tpu.memory_space<smem>>
    %8 = vector.broadcast %7 : f32 to vector<16x1xf32>
    %9 = arith.mulf %6, %8 : vector<16x1xf32>
    %10 = vector.broadcast %9 : vector<16x1xf32> to vector<16x128xf32>
    %11 = arith.mulf %5, %10 : vector<16x128xf32>
    %c0_7 = arith.constant 0 : index
    %c0_8 = arith.constant 0 : index
    %12 = vector.load %arg8[%c0_7, %c0_8] : memref<16x128xf32, #tpu.memory_space<vmem>>, vector<16x128xf32>
    tpu.vector_store %arg8[%c0_7, %c0_8], %11 {strides = array<i32>} : memref<16x128xf32, #tpu.memory_space<vmem>>, vector<16x128xf32>,
    return
  }
  func.func @transform_0(%arg0: i32, %arg1: i32, %arg2: memref<1xf32, #tpu.memory_space<smem>>) -> (i32, i32) {
    %c0_i32 = arith.constant 0 : i32
    %c0_i32_0 = arith.constant 0 : i32
    return %arg0, %c0_i32 : i32, i32
  }
  func.func @transform_1(%arg0: i32, %arg1: i32, %arg2: memref<1xf32, #tpu.memory_space<smem>>) -> (i32, i32) {
    %c0_i32 = arith.constant 0 : i32
    %c0_i32_0 = arith.constant 0 : i32
    %c0_i32_1 = arith.constant 0 : i32
    return %c0_i32, %c0_i32_0 : i32, i32
  }
  func.func @transform_2(%arg0: i32, %arg1: i32, %arg2: memref<1xf32, #tpu.memory_space<smem>>) -> (i32, i32) {
    %c0_i32 = arith.constant 0 : i32
    %c0_i32_0 = arith.constant 0 : i32
    %c0_i32_1 = arith.constant 0 : i32
    return %c0_i32, %c0_i32_0 : i32, i32
  }
  func.func @transform_3(%arg0: i32, %arg1: i32, %arg2: memref<1xf32, #tpu.memory_space<smem>>) -> (i32, i32) {
    %c0_i32 = arith.constant 0 : i32
    %c0_i32_0 = arith.constant 0 : i32
    %c0_i32_1 = arith.constant 0 : i32
    return %c0_i32, %c0_i32_0 : i32, i32
  }
  func.func @transform_4(%arg0: i32, %arg1: i32, %arg2: memref<1xf32, #tpu.memory_space<smem>>) -> (i32, i32) {
    %c0_i32 = arith.constant 0 : i32
    %c0_i32_0 = arith.constant 0 : i32
    return %c0_i32, %arg1 : i32, i32
  }
  func.func @transform_5(%arg0: i32, %arg1: i32, %arg2: memref<1xf32, #tpu.memory_space<smem>>) -> (i32, i32) {
    %c0_i32 = arith.constant 0 : i32
    return %arg0, %arg1 : i32, i32
  }
}

</mosaic_0001>

<bundles_post_ra>
// kernel: tpu_custom_call.1
= control target key start
LH: loop header
LB: loop body
LE: loop exit
PB: predicated region body
PF: predicated region fallthrough
CT: control target
= control target key end

     0   :  { %12 = vsyncpa [#allocation7], 0  ;;  %s566_s0 = inlined_call_operand.<no memory space> [shape: f32[1], index: 0, kind: input, shape index: {}]   ;;  %s567_s1 = inlined_call_operand.hbm [shape: f32[16,32], index: 1, kind: input, shape index: {}]   ;;  %s568_s2 = inlined_call_operand.vmem [shape: f32[1,32], index: 2, kind: input, shape index: {}]   ;;  %s569_s3 = inlined_call_operand.vmem [shape: f32[1,32], index: 3, kind: input, shape index: {}]   ;;  %s570_s4 = inlined_call_operand.hbm [shape: f32[32,32], index: 4, kind: input, shape index: {}]   ;;  %s571_s5 = inlined_call_operand.vmem [shape: bf16[32,128], index: 5, kind: input, shape index: {}]   ;;  %s572_s6 = inlined_call_operand.hbm [shape: f32[16,128], index: 6, kind: output, shape index: {}]  }
   0x1   :  { %13 = vsyncpa [#allocation10], 0 }
   0x2   :  { %14 = vsyncpa [#allocation8], 0  ;;  %s453_s21 = smov [#allocation6]   ;;  %s381_s25 = scalar_lea.hbm %s567_s1, 256 }
   0x3   :  { %s20_s22 = sshll.u32 %s453_s21, 4  ;;  %p382_p0 = scmp.ne.s32.totalorder %s567_s1, %s381_s25  ;;  %s21_s22 = int_to_ptr.vmem [resolvable:$true] %s20_s22 }
   0x4   :  { %p385_p1 = scmp.lt.u32.totalorder %s381_s25, %s567_s1 }
   0x6   :  { %p387_p2 = pnand %p385_p1, %p382_p0 }
   0x8   :  { %390 = shalt.err (!%p387_p2)
}
   0x9   :  { %s391_s30 = scalar_lea.vmem %s21_s22, 256  ;;  %p396_p4 = scmp.lt.s32.totalorder %s21_s22, %s21_s22 }
   0xa   :  { %p392_p3 = scmp.ne.s32.totalorder %s21_s22, %s391_s30  ;;  %p397_p5 = scmp.lt.s32.totalorder %s391_s30, %s391_s30 }
   0xc   :  { %p398_p6 = por %p397_p5, %p396_p4 }
   0xe   :  { %p399_p7 = pnand %p398_p6, %p392_p3 }
  0x10   :  { %402 = shalt.err (!%p399_p7)
}
  0x11   :  { %s454_s7 = smov 128   ;;  %s455_s8 = smov 8  }
  0x12   :  { %26 = dma.hbm_to_vmem [thread:$0]  %s567_s1, 256, %s21_s22, [#allocation7], %s454_s7, %s454_s7, %s455_s8  }
  0x13   :  { %s456_s11 = smov [#allocation9]   ;;  %s403_s15 = scalar_lea.hbm %s570_s4, 512 }
  0x14   :  { %s36_s12 = sshll.u32 %s456_s11, 4  ;;  %p404_p8 = scmp.ne.s32.totalorder %s570_s4, %s403_s15  ;;  %s37_s12 = int_to_ptr.vmem [resolvable:$true] %s36_s12 }
  0x15   :  { %p407_p9 = scmp.lt.u32.totalorder %s403_s15, %s570_s4 }
  0x17   :  { %p409_p10 = pnand %p407_p9, %p404_p8 }
  0x19   :  { %412 = shalt.err (!%p409_p10)
}
  0x1a   :  { %s413_s20 = scalar_lea.vmem %s37_s12, 512  ;;  %p418_p12 = scmp.lt.s32.totalorder %s37_s12, %s37_s12 }
  0x1b   :  { %p414_p11 = scmp.ne.s32.totalorder %s37_s12, %s413_s20  ;;  %p419_p13 = scmp.lt.s32.totalorder %s413_s20, %s413_s20 }
  0x1d   :  { %p420_p0 = por %p419_p13, %p418_p12 }
  0x1f   :  { %p421_p1 = pnand %p420_p0, %p414_p11 }
  0x21   :  { %424 = shalt.err (!%p421_p1)
}
  0x22   :  { %42 = dma.hbm_to_vmem [thread:$0]  %s570_s4, 512, %s37_s12, [#allocation10], %s454_s7, %s454_s7, %s455_s8  }
  0x23   :  { %447 = dma.done.wait [#allocation7], 256  }
  0x24   :  { %448 = vsyncadd [#allocation7], 4294967040 }
  0x25   :  { %449 = dma.done.wait [#allocation10], 512  }
  0x26   :  { %450 = vsyncadd [#allocation10], 4294966784  ;;  %vm58_vm0 = vcmask 261120   ;;  %v56_v0 = vld [vmem:[#allocation6] sm:$0xff]  ;;  %v57_v1 = vld [vmem:[#allocation6 + $0x8] sm:$0xff]  ;;  %v457_v42 = vmov 0   ;;  %v281_v50 = vstv %s566_s0 }
  0x27   :  { %v59_v2 = vsel %vm58_vm0, %v56_v0, 0.0  ;;  %v62_v3 = vsel %vm58_vm0, %v57_v1, 0.0  ;;  %v104_v14 = vld [vmem:[#allocation9] sm:$0xff]  ;;  %v105_v15 = vld [vmem:[#allocation9 + $0x8] sm:$0xff]  ;;  %v106_v16 = vld [vmem:[#allocation9 + $0x10] sm:$0xff]  ;;  %370 = vset.pattern.permute.xlu1 %v457_v42  ;;  %369 = vset.pattern.permute.xlu0 %v457_v42  ;;  %v458_v44 = vmov 0.0  }
  0x28   :  { %60 = vadd.xlane.f32.xlu0 %v59_v2  ;;  %v351_v17 = vpack.c.bf16 %v105_v15, %v104_v14  ;;  %v107_v18 = vld [vmem:[#allocation9 + $0x18] sm:$0xff]  ;;  %343 = vmatprep.subr.bf16.mxu1 %v458_v44  ;;  %v372_v45 = vld [vmem:[%s571_s5 + $0x8] sm:$0xff]   ;;  %vm459_vm1 = vmmov 0   ;;  %vm213_vm2 = vcmask 7168   ;;  %s460_s0 = smov [#allocation11]  }
  0x29   :  { %v355_v19 = vpack.c.bf16 %v107_v18, %v106_v16  ;;  %v316_v27 = vld [vmem:[%s568_s2] ss:$0 sm:$0xff]  ;;  %347 = vmatprep.mubr.msk.bf16.mxu1 %vm459_vm1, %v458_v44 }
  0x2a   :  { %352 = vmatprep.subr.bf16.mxu0 %v351_v17  ;;  %v317_v29 = vld [vmem:[%s569_s3] ss:$0 sm:$0xff] }
  0x2b   :  { %354 = vmatpush3.bf16.msra.mxu0 %v351_v17  ;;  %v371_v43 = vld [vmem:[%s571_s5] sm:$0xff]   ;;  %s303_s5 = sshll.u32 %s460_s0, 4  ;;  %s304_s5 = int_to_ptr.vmem [resolvable:$true] %s303_s5 }
  0x2c   :  { %63 = vadd.xlane.f32.xlu0 %v62_v3  ;;  %356 = vmatprep.subr.bf16.mxu0 %v355_v19  ;;  %s425_s29 = scalar_lea.vmem %s304_s5, 256  ;;  %p430_p3 = scmp.lt.s32.totalorder %s304_s5, %s304_s5 }
  0x2d   :  { %344 = vmatpush3.bf16.msra.mxu1 %v371_v43  ;;  %p426_p2 = scmp.ne.s32.totalorder %s304_s5, %s425_s29  ;;  %p431_p4 = scmp.lt.s32.totalorder %s425_s29, %s425_s29 }
  0x2e   :  { %345 = vmatprep.subr.bf16.mxu1 %v458_v44 }
  0x2f   :  { %358 = vmatpush3.bf16.msra.mxu0 %v355_v19  ;;  %p432_p5 = por %p431_p4, %p430_p3 }
  0x31   :  { %346 = vmatpush3.bf16.msra.mxu1 %v372_v45  ;;  %p433_p6 = pnand %p432_p5, %p426_p2 }
  0xb5   :  { %v61_v4 = vpop.xlane.xlu0 %60 }
  0xb6   :  { %v66_v5 = vmul.f32 0.03125, %v61_v4 }
  0xb8   :  { %v68_v6 = vsub.f32 %v56_v0, %v66_v5 }
  0xb9   :  { %v64_v7 = vpop.xlane.xlu0 %63 }
  0xba   :  { %v67_v8 = vmul.f32 0.03125, %v64_v7  ;;  %v70_v9 = vmul.f32 %v68_v6, %v68_v6 }
  0xbc   :  { %v69_v10 = vsub.f32 %v57_v1, %v67_v8  ;;  %v72_v11 = vsel %vm58_vm0, %v70_v9, 0.0 }
  0xbd   :  { %73 = vadd.xlane.f32.xlu1 %v72_v11 }
  0xbe   :  { %v71_v12 = vmul.f32 %v69_v10, %v69_v10 }
  0xc0   :  { %v75_v13 = vsel %vm58_vm0, %v71_v12, 0.0 }
  0xc1   :  { %76 = vadd.xlane.f32.xlu1 %v75_v13 }
 0x14a   :  { %v74_v20 = vpop.xlane.xlu1 %73 }
 0x14b   :  { %v78_v21 = vmul.f32 0.03125, %v74_v20 }
 0x14d   :  { %v80_v22 = vadd.f32 1e-06, %v78_v21 }
 0x14e   :  { %v77_v23 = vpop.xlane.xlu1 %76 }
 0x14f   :  { %373 = vrsqrt.f32 %v80_v22  ;;  %v79_v24 = vmul.f32 0.03125, %v77_v23 }
 0x151   :  { %v81_v25 = vadd.f32 1e-06, %v79_v24 }
 0x153   :  { %375 = vrsqrt.f32 %v81_v25 }
 0x159   :  { %v374_v26 = vpop.eup %373 }
 0x15a   :  { %v84_v28 = vmul.f32 %v374_v26, %v68_v6 }
 0x15c   :  { %v93_v30 = vmul.f32 %v316_v27, %v84_v28 }
 0x15d   :  { %v376_v31 = vpop.eup %375 }
 0x15e   :  { %v85_v32 = vmul.f32 %v376_v31, %v69_v10  ;;  %v102_v33 = vadd.f32 %v317_v29, %v93_v30 }
 0x160   :  { %v94_v34 = vmul.f32 %v316_v27, %v85_v32  ;;  %340 = vmatprep.mubr.msk.f32.mxu0 %vm58_vm0, %v102_v33 }
 0x162   :  { %v103_v35 = vadd.f32 %v317_v29, %v94_v34 }
 0x164   :  { %341 = vmatmul.mubr.msk.f32.vlgmr.msra.gmra.mrb[0].mxu0 %vm58_vm0, %v103_v35 }
 0x237   :  { %v342_v36 = vpop.f32.mrb[0].mxu0 }
 0x238   :  { %v190_v37 = vand.u32 2147483647, %v342_v36  ;;  %v180_v38 = vpop.f32.mrb[1].mxu0 }
 0x239   :  { %v189_v39 = vand.u32 2147483647, %v180_v38 }
 0x23a   :  { %v194_v40 = vsel %vm58_vm0, %v190_v37, -inf }
 0x23b   :  { %195 = vmax.xlane.f32.xlu1 %v194_v40  ;;  %v191_v41 = vsel %vm58_vm0, %v189_v39, -inf }
 0x23c   :  { %192 = vmax.xlane.f32.xlu0 %v191_v41 }
 0x2c8   :  { %v196_v46 = vpop.xlane.xlu1 %195 }
 0x2c9   :  { %v198_v47 = vmax.f32 %v196_v46, 1e-05  ;;  %v193_v48 = vpop.xlane.xlu0 %192 }
 0x2ca   :  { %v197_v49 = vmax.f32 %v193_v48, 1e-05 }
 0x2cb   :  { %377 = vrcp.f32 %v198_v47  ;;  %215 = vst.msk [vmem:[#allocation3 + $0x8] sm:$0xff] %vm213_vm2, %v198_v47 }
 0x2cc   :  { %379 = vrcp.f32 %v197_v49  ;;  %214 = vst.msk [vmem:[#allocation3] sm:$0xff] %vm213_vm2, %v197_v49 }
 0x2d2   :  { %v279_v51 = vld [vmem:[#allocation3 + $0x8] sm:$0xff] }
 0x2d3   :  { %v283_v52 = vmul.f32 %v281_v50, %v279_v51  ;;  %v278_v53 = vld [vmem:[#allocation3] sm:$0xff] }
 0x2d4   :  { %v282_v54 = vmul.f32 %v281_v50, %v278_v53 }
 0x2d5   :  { %v378_v55 = vpop.eup %377  ;;  %291 = vperm.xlu1 %370, %v283_v52  }
 0x2d6   :  { %v380_v56 = vpop.eup %379  ;;  %v202_v57 = vmul.f32 127.0, %v378_v55  ;;  %286 = vperm.xlu0 %369, %v282_v54  }
 0x2d7   :  { %v200_v58 = vmul.f32 127.0, %v380_v56 }
 0x2d8   :  { %v204_v59 = vmul.f32 %v342_v36, %v202_v57 }
 0x2d9   :  { %v203_v60 = vmul.f32 %v200_v58, %v180_v38 }
 0x2da   :  { %v360_v61 = vround.rtne.f32 %v204_v59 }
 0x2db   :  { %v359_v62 = vround.rtne.f32 %v203_v60 }
 0x2dc   :  { %v208_v63 = vmax.f32 %v360_v61, -128.0 }
 0x2dd   :  { %v207_v0 = vmax.f32 %v359_v62, -128.0 }
 0x2de   :  { %v210_v1 = vmin.f32 %v208_v63, 127.0 }
 0x2df   :  { %v209_v2 = vmin.f32 %v207_v0, 127.0 }
 0x2e1   :  { %v211_v3 = vpack.c.bf16 %v210_v1, %v209_v2 }
 0x2e3   :  { %212 = vst.msk [vmem:[#allocation2] sm:$0xff] %vm58_vm0, %v211_v3 }
 0x2ea   :  { %v216_v4 = vld [vmem:[#allocation2] sm:$0xff] }
 0x2eb   :  { %348 = vmatmul.mubr.msk.bf16.vlgmr.msra.gmra.mrb[0].mxu1 %vm58_vm0, %v216_v4 }
 0x354   :  { %v292_v9 = vpop.permute.xlu1 %291 }
 0x355   :  { %v287_v5 = vpop.permute.xlu0 %286 }
 0x3be   :  { %v271_v6 = vpop.f32.mrb[0].mxu1 }
 0x3bf   :  { %v294_v7 = vmul.f32 %v287_v5, %v271_v6  ;;  %v349_v8 = vpop.f32.mrb[1].mxu1 }
 0x3c0   :  { %v274_v10 = vpop.f32.mrb[2].mxu1 }
 0x3c1   :  { %296 = vst [vmem:[#allocation11] sm:$0xff] %v294_v7  ;;  %v295_v11 = vmul.f32 %v292_v9, %v274_v10  ;;  %v350_v12 = vpop.f32.mrb[3].mxu1 }
 0x3c3   :  { %297 = vst [vmem:[#allocation11 + $0x8] sm:$0xff] %v295_v11 }
 0x3c4   :  { %436 = shalt.err (!%p433_p6)
}
 0x3c5   :  { %s437_s10 = scalar_lea.hbm %s572_s6, 256 }
 0x3c6   :  { %p438_p7 = scmp.ne.s32.totalorder %s572_s6, %s437_s10  ;;  %p441_p8 = scmp.lt.u32.totalorder %s437_s10, %s572_s6 }
 0x3c8   :  { %p443_p9 = pnand %p441_p8, %p438_p7 }
 0x3ca   :  { %446 = shalt.err (!%p443_p9)
}
 0x3cb   :  { %309 = dma.vmem_to_hbm [thread:$0]  %s304_s5, 256, %s572_s6, [#allocation8], %s454_s7, %s454_s7, %s455_s8  }
 0x3cc   :  { %451 = dma.done.wait [#allocation8], 256  }
 0x3cd   :  { %452 = vsyncadd [#allocation8], 4294967040 }
 0x3ce   :  { %313 = vsyncpa [#allocation7], 1 }
 0x3cf   :  { %314 = vsyncpa [#allocation10], 1 }
 0x3d0   :  { %315 = vsyncpa [#allocation8], 1 }

</bundles_post_ra>
